<compile_context>
chip_gen: v7x
topology: tpu7x:2x2x1
jax: 0.10.0
libtpu: 0.0.40
codegen_flags: <defaults>
</compile_context>

<pallas_src>
import math
import typing as tp
from functools import partial

import numpy as np
import jax
import jax.numpy as jnp
from jax.experimental import pallas as pl
from jax.experimental.pallas import tpu as pltpu


class Neighbors(tp.NamedTuple):
    indices: jax.Array       # (2, P) int32 (torch reference uses int64)
    distances: jax.Array     # (P,)   float32
    diff_vectors: jax.Array  # (P, 3) float32


# ----------------------------------------------------------------------------
# Pallas kernel: pairwise geometry (diff vectors + distances), slab layout.
# Input : (6, TILE) f32 slab — rows 0..2 = coords of atom i, rows 3..5 = coords
#         of atom j with the PBC shift already folded in (cj - shift).
# Output: (4, TILE) f32 slab — rows 0..2 = diff xyz, row 3 = distance.
# ----------------------------------------------------------------------------

_MAX_LANE_TILE = 16384   # big tiles amortize the ~0.35 us per-grid-step overhead
_LANE_CHUNK = 512        # in-kernel strip-mine width -> ~16-20 live vregs / chunk


def _round_up(x: int, m: int) -> int:
    return ((x + m - 1) // m) * m


def _choose_tiling(p: int) -> tp.Tuple[int, int]:
    """Return (p_pad, tile) with p_pad % tile == 0, tile % 128 == 0, tile <= MAX.

    Padding waste is bounded by ~ntiles*128 pairs (vs up to ~2x before), and at
    least 2 (>=4 for larger P) grid steps are produced so v7x's second
    TensorCore gets work.
    """
    p_pad0 = _round_up(max(p, 1), 128)
    ntiles = max(1, -(-p_pad0 // _MAX_LANE_TILE))
    if p_pad0 >= 4096:
        ntiles = max(ntiles, 4)
    elif p_pad0 >= 1024:
        ntiles = max(ntiles, 2)
    tile = _round_up(-(-p_pad0 // ntiles), 128)
    while tile > _MAX_LANE_TILE:
        ntiles += 1
        tile = _round_up(-(-p_pad0 // ntiles), 128)
    return ntiles * tile, tile


def _pair_geom_kernel(c_ref, out_ref):
    """c_ref: (6, TILE) f32; out_ref: (4, TILE) f32 (diff xyz + distance)."""
    tile = c_ref.shape[1]
    off = 0
    # Static strip-mine over lane chunks: keeps live vregs small at big tiles.
    while off < tile:
        chunk = min(_LANE_CHUNK, tile - off)
        c = c_ref[:, pl.ds(off, chunk)]                       # (6, chunk)
        diff = c[0:3, :] - c[3:6, :]                          # (3, chunk)
        dist = jnp.sqrt(jnp.sum(diff * diff, axis=0, keepdims=True))
        # Single full-block store (no partial-sublane vst.msk pairs).
        out_ref[:, pl.ds(off, chunk)] = jnp.concatenate([diff, dist], axis=0)
        off += chunk


def _pair_geometry_call(slab_in, *, tile):
    """slab_in: (6, P_pad) f32 -> (4, P_pad) f32 result slab."""
    _, p_pad = slab_in.shape
    grid = (p_pad // tile,)
    return pl.pallas_call(
        _pair_geom_kernel,
        out_shape=jax.ShapeDtypeStruct((4, p_pad), jnp.float32),
        grid=grid,
        in_specs=[pl.BlockSpec((6, tile), lambda i: (0, i))],
        out_specs=pl.BlockSpec((4, tile), lambda i: (0, i)),
        compiler_params=pltpu.CompilerParams(dimension_semantics=("parallel",)),
        cost_estimate=pl.CostEstimate(
            flops=8 * p_pad,
            transcendentals=p_pad,
            bytes_accessed=(6 + 4) * 4 * p_pad,
        ),
    )(slab_in)


# ----------------------------------------------------------------------------
# Jitted device wrappers: gather + shift fold + slab build + kernel + mask.
# Recompile only per (p_pad, tile) bucket — inputs are already padded.
# ----------------------------------------------------------------------------

@partial(jax.jit, static_argnames=("tile", "finite_cutoff"))
def _geometry_open(coords_t, idx_pad, cutoff, *, tile, finite_cutoff):
    c0 = jnp.take(coords_t, idx_pad[0], axis=1)               # (3, P_pad)
    c1 = jnp.take(coords_t, idx_pad[1], axis=1)               # (3, P_pad)
    slab = _pair_geometry_call(jnp.concatenate([c0, c1], axis=0), tile=tile)
    mask = (slab[3, :] <= cutoff) if finite_cutoff else None
    return slab, mask


@partial(jax.jit, static_argnames=("tile",))
def _geometry_pbc(coords_t, idx_pad, shift_idx_t, cell, cutoff, *, tile):
    c0 = jnp.take(coords_t, idx_pad[0], axis=1)               # (3, P_pad)
    c1 = jnp.take(coords_t, idx_pad[1], axis=1)               # (3, P_pad)
    # shifts = shift_idxs @ cell, rebuilt on-device from int8 shift indices.
    shift_t = cell.T @ shift_idx_t.astype(jnp.float32)        # (3, P_pad)
    slab = _pair_geometry_call(
        jnp.concatenate([c0, c1 - shift_t], axis=0), tile=tile)
    return slab, slab[3, :] <= cutoff


# ----------------------------------------------------------------------------
# Cell-list bookkeeping (host-side glue; data-dependent shapes)
# ----------------------------------------------------------------------------

_OFFSET_IDX3 = np.array(
    [[-1, 0, 0], [-1, -1, 0], [0, -1, 0], [1, -1, 0], [-1, 1, -1], [0, 1, -1],
     [1, 1, -1], [-1, 0, -1], [0, 0, -1], [1, 0, -1], [-1, -1, -1],
     [0, -1, -1], [1, -1, -1]],
    dtype=np.int64,
)


def _cumsum_from_zero(x):
    out = np.zeros_like(x)
    if x.shape[0] > 1:
        out[1:] = np.cumsum(x[:-1])
    return out


def _fast_masked_select(x, mask, axis):
    idx = np.nonzero(mask.reshape(-1))[0]
    return np.take(x, idx, axis=axis)


def _coords_to_fractional(coords, cell):
    frac = coords @ np.linalg.inv(cell)
    frac = frac - np.floor(frac)
    frac[frac >= 1.0] -= 1.0
    frac[frac < 0.0] += 1.0
    return frac


def _coords_to_grid_idx3(coords, cell, grid_shape):
    frac = _coords_to_fractional(coords, cell)
    return np.floor(frac * grid_shape).astype(np.int64)


def _flatten_idx3(idx3, grid_shape):
    factors = np.array(
        [grid_shape[1] * grid_shape[2], grid_shape[2], 1], dtype=np.int64
    )
    return (idx3 * factors).sum(-1)


def _count_atoms_in_buckets(atom_grid_idx, grid_shape):
    atom_grid_idx = atom_grid_idx.reshape(-1)
    count = np.bincount(atom_grid_idx, minlength=int(np.prod(grid_shape)))
    return count, _cumsum_from_zero(count)


def _tril_indices(n, offset):
    r, c = np.tril_indices(n, k=offset)
    return np.stack([r, c], axis=0).astype(np.int64)


def _image_pairs_within(count_in_grid, cumcount_in_grid, count_max):
    haspairs = np.nonzero(count_in_grid > 1)[0]
    count_h = count_in_grid[haspairs]
    cum_h = cumcount_in_grid[haspairs]
    pairs_fullest = _tril_indices(count_max, -1)  # (2, T)
    pw = (pairs_fullest.reshape(2, 1, -1) + cum_h.reshape(1, -1, 1)).reshape(2, -1)
    paircount = (count_h * (count_h - 1)) // 2
    mask = (
        np.arange(pairs_fullest.shape[1]).reshape(1, -1) < paircount.reshape(-1, 1)
    )
    return _fast_masked_select(pw, mask, 1)


def _lower_image_pairs_between(count_sur, cumcount_sur, shift_idxs_between, count_max):
    mols, atoms, neighbors = count_sur.shape
    padded = np.arange(count_max, dtype=np.int64).reshape(1, 1, 1, -1)
    padded = np.broadcast_to(padded, (mols, atoms, neighbors, count_max)).copy()
    mask = padded < count_sur[..., None]
    padded = padded + cumcount_sur[..., None]
    shifts = shift_idxs_between[:, :, :, None, :]
    shifts = np.broadcast_to(shifts, (mols, atoms, neighbors, count_max, 3))
    lower = _fast_masked_select(padded.reshape(-1), mask, 0)
    shifts_sel = _fast_masked_select(shifts.reshape(-1, 3), mask, 0)
    return lower, shifts_sel


def _cell_list(grid_shape, coords, cell):
    atom_grid_idx3 = _coords_to_grid_idx3(coords, cell, grid_shape)   # (1, A, 3)
    atom_grid_idx = _flatten_idx3(atom_grid_idx3, grid_shape)         # (1, A)
    count_in_grid, cumcount_in_grid = _count_atoms_in_buckets(atom_grid_idx, grid_shape)
    count_max = int(count_in_grid.max()) if count_in_grid.size else 0
    pairs_within = _image_pairs_within(count_in_grid, cumcount_in_grid, count_max)

    offset = _OFFSET_IDX3.reshape(1, 1, -1, 3)
    atom_surr_idx3 = atom_grid_idx3[:, :, None, :] + offset
    shift_idxs_between = -np.floor_divide(atom_surr_idx3, grid_shape)
    atom_surr_idx = _flatten_idx3(np.mod(atom_surr_idx3, grid_shape), grid_shape)
    count_sur = count_in_grid[atom_surr_idx]
    cumcount_sur = cumcount_in_grid[atom_surr_idx]
    lower_between, shift_idxs_between = _lower_image_pairs_between(
        count_sur, cumcount_sur, shift_idxs_between, count_max
    )
    total_count_sur = count_sur.sum(-1).reshape(-1)

    atom_grid_flat = atom_grid_idx.reshape(-1)
    image_to_atom = np.argsort(atom_grid_flat, kind="stable")
    atom_to_image = np.argsort(image_to_atom, kind="stable")

    upper_between = np.repeat(atom_to_image, total_count_sur)
    pairs_between = np.stack([upper_between, lower_between], axis=0)
    shift_idxs_within = np.zeros((pairs_within.shape[1], 3), dtype=np.int64)
    shift_idxs = np.concatenate([shift_idxs_between, shift_idxs_within], axis=0)
    image_pairs = np.concatenate([pairs_between, pairs_within], axis=1)
    neighbor_idxs = image_to_atom[image_pairs]
    return neighbor_idxs, shift_idxs


def _compute_bounding_cell(coords, eps, displace=True, square=False):
    flat = coords.reshape(-1, 3)
    min_ = flat.min(axis=0) - eps
    max_ = flat.max(axis=0) + eps
    largest = (max_ - min_).astype(np.float32)
    if square:
        cell = np.eye(3, dtype=np.float32) * largest.max()
    else:
        cell = np.eye(3, dtype=np.float32) * largest
    if displace:
        return (coords - min_).astype(np.float32), cell
    return coords.astype(np.float32), cell


def _setup_grid(cell, cutoff, buckets_per_cutoff=1, extra_space=1e-05):
    bucket_lower = np.ones(3, dtype=np.float32) * cutoff / buckets_per_cutoff + extra_space
    cell_lengths = np.linalg.norm(cell, axis=0)
    return np.floor(cell_lengths / bucket_lower).astype(np.int64)


def _map_to_central_np(coords, cell, pbc):
    inv_cell = np.linalg.inv(cell)
    frac = coords @ inv_cell
    frac = frac - np.floor(frac) * pbc.astype(frac.dtype)
    return frac @ cell


def _validate_inputs(cutoff, species, coords, cell, pbc):
    if cutoff <= 0.0:
        raise ValueError("Cutoff must be a strictly positive float")
    if coords.shape[0] != 1:
        raise ValueError("This neighborlist doesn't support batches")
    if pbc is not None:
        if not bool(np.asarray(pbc).any()):
            raise ValueError("pbc all-False is not supported, use pbc = None")
        if cell is None:
            raise ValueError("If pbc is not None, cell should be present")
        if not bool(np.asarray(pbc).all()):
            raise ValueError("This neighborlist doesn't support partial PBC")
    elif cell is not None:
        raise ValueError("Cell is not supported if not using pbc")


def _empty_neighbors():
    return Neighbors(
        indices=jnp.zeros((2, 0), jnp.int32),
        distances=jnp.zeros((0,), jnp.float32),
        diff_vectors=jnp.zeros((0, 3), jnp.float32),
    )


def _narrow_down(cutoff, elem_idxs, coords, neighbor_idxs, shift_idxs=None, cell=None):
    """Screen candidate pairs against `cutoff` and compute final geometry.

    Single Pallas geometry pass (diff + dist for all candidates); the surviving
    subset is gathered from that result (forward values identical to the torch
    reference, which recomputes them only to re-attach autograd).
    """
    elem_flat = np.asarray(jax.device_get(elem_idxs)).reshape(-1)
    neighbor_idxs = np.asarray(neighbor_idxs)
    if shift_idxs is not None:
        shift_idxs = np.asarray(shift_idxs)

    dummy_mask = elem_flat == -1
    if dummy_mask.any():
        pair_mask = dummy_mask[neighbor_idxs.reshape(-1)].reshape(2, -1)
        keep = np.nonzero(~np.any(pair_mask, axis=0))[0]
        neighbor_idxs = neighbor_idxs[:, keep]
        if shift_idxs is not None:
            shift_idxs = shift_idxs[keep]

    if cutoff == math.inf and shift_idxs is not None:
        raise ValueError("PBC can't use an infinite cutoff")

    p = int(neighbor_idxs.shape[1])
    if p == 0:
        return _empty_neighbors()

    p_pad, tile = _choose_tiling(p)

    # (3, A) coordinate table stays on device; gathers run on device (jitted).
    coords_t = jnp.asarray(coords, jnp.float32).reshape(-1, 3).T

    # Compact H2D transfer + device-side pad (no host-built padded slabs).
    idx_dev = jnp.asarray(neighbor_idxs.astype(np.int32))          # (2, p)
    idx_pad = jnp.pad(idx_dev, ((0, 0), (0, p_pad - p)))

    if shift_idxs is not None:
        cell_dev = jnp.asarray(cell, jnp.float32).reshape(3, 3)
        sidx_dev = jnp.asarray(shift_idxs.T.astype(np.int8))       # (3, p) in {-1,0,1}
        sidx_pad = jnp.pad(sidx_dev, ((0, 0), (0, p_pad - p)))
        slab, mask = _geometry_pbc(
            coords_t, idx_pad, sidx_pad, cell_dev, jnp.float32(cutoff), tile=tile)
    else:
        finite = cutoff != math.inf
        slab, mask = _geometry_open(
            coords_t, idx_pad, jnp.float32(cutoff if finite else 0.0),
            tile=tile, finite_cutoff=finite)

    if mask is not None:
        # Single host sync (needed to size the dynamically-shaped output);
        # payload is a 1 B/pair bool mask instead of 4 B/pair float distances.
        mask_np = np.asarray(jax.device_get(mask))[:p]
        in_cutoff = np.nonzero(mask_np)[0].astype(np.int32)
        if in_cutoff.size == 0:
            return _empty_neighbors()
        neighbor_idxs = neighbor_idxs[:, in_cutoff]
        kept = jnp.take(slab, jnp.asarray(in_cutoff), axis=1)      # (4, K)
        diff = kept[:3, :].T
        dist = kept[3, :]
    else:
        diff = slab[:3, :p].T
        dist = slab[3, :p]

    return Neighbors(
        indices=jnp.asarray(neighbor_idxs.astype(np.int32)),  # TODO(synk): torch uses int64
        distances=dist,
        diff_vectors=diff,
    )


# ----------------------------------------------------------------------------
# VerletCellList module port
# ----------------------------------------------------------------------------

class VerletCellList:
    """Cell-list neighborlist with a Verlet 'skin' cache (JAX/Pallas port)."""

    def __init__(self, skin: float = 1.0):
        if skin <= 0.0:
            raise ValueError("skin must be a positive float")
        self.skin = skin
        self._prev_shift_idxs = np.zeros(1, dtype=np.int64)
        self._prev_neighbor_idxs = np.zeros(1, dtype=np.int64)
        self._prev_coords = np.zeros(1, dtype=np.float32)
        self._prev_cell = np.eye(3, dtype=np.float32)
        self._prev_values_are_cached = False

    def __call__(self, cutoff, species, coords, cell=None, pbc=None):
        _validate_inputs(cutoff, species, coords, cell, pbc)
        coords_np = np.asarray(jax.device_get(coords), dtype=np.float32)
        if pbc is not None:
            assert cell is not None
            displ_coords = coords_np
            cell_np = np.asarray(jax.device_get(cell), dtype=np.float32)
        else:
            displ_coords, cell_np = _compute_bounding_cell(coords_np, eps=cutoff + 0.001)
        grid_shape = _setup_grid(cell_np, cutoff + self.skin)
        if pbc is not None:
            if (grid_shape == 0).any():
                raise RuntimeError("Cell is too small to perform pbc calculations")
        else:
            grid_shape = np.maximum(grid_shape, np.ones_like(grid_shape))

        if self._can_use_prev_list(displ_coords, cell_np):
            neighbor_idxs = self._prev_neighbor_idxs.astype(np.int64)
            shift_idxs = self._prev_shift_idxs.astype(np.int64)
        else:
            neighbor_idxs, shift_idxs = _cell_list(grid_shape, displ_coords, cell_np)
            self._cache_values(neighbor_idxs, shift_idxs, displ_coords, cell_np)

        if pbc is not None:
            pbc_np = np.asarray(jax.device_get(pbc)).astype(bool)
            coords_central = _map_to_central_np(coords_np, cell_np, pbc_np)
            return _narrow_down(cutoff, species, coords_central, neighbor_idxs,
                                shift_idxs=shift_idxs, cell=cell_np)
        return _narrow_down(cutoff, species, coords, neighbor_idxs)

    def _cache_values(self, neighbor_idxs, shift_idxs, coords, cell):
        self._prev_shift_idxs = np.asarray(shift_idxs)
        self._prev_neighbor_idxs = np.asarray(neighbor_idxs)
        self._prev_coords = np.asarray(coords)
        self._prev_cell = np.asarray(cell)
        self._prev_values_are_cached = True

    def reset_cached_values(self):
        self._cache_values(
            np.zeros(1, dtype=np.int64), np.zeros(1, dtype=np.int64),
            np.zeros(1, dtype=np.float32), np.eye(3, dtype=np.float32),
        )
        self._prev_values_are_cached = False

    def _can_use_prev_list(self, coords, cell):
        # Faithful port of the torch reference, including its comparison sense
        # (reference returns True when ALL displacements exceed (skin/2)^2).
        if not self._prev_values_are_cached:
            return False
        scaling = np.linalg.norm(cell, axis=1) / np.linalg.norm(self._prev_cell, axis=1)
        pbc = np.array([True, True, True])
        delta = (
            _map_to_central_np(coords, cell, pbc)
            - _map_to_central_np(self._prev_coords, self._prev_cell, pbc) * scaling
        )
        dist_squared = (delta ** 2).sum(-1)
        return bool((dist_squared > (self.skin / 2) ** 2).all())


# TODO(synk): the dynamic-shape cell-list bookkeeping (argsort/bincount/nonzero/
# masked_select/repeat_interleave) stays as eager host glue; no Pallas equivalent.


if __name__ == "__main__":
    key = jax.random.PRNGKey(0)
    k1, k2 = jax.random.split(key)
    n_atoms = 8
    species = jnp.zeros((1, n_atoms), dtype=jnp.int32)

    # Non-PBC (open-boundary) path — exercises the no-shift slab build.
    coords = jax.random.uniform(
        k1, (1, n_atoms, 3), dtype=jnp.float32, minval=0.0, maxval=12.0
    )
    nl = VerletCellList(skin=1.0)
    neighbors = nl(5.2, species, coords)
    jax.block_until_ready(neighbors.distances)
    jax.block_until_ready(neighbors.diff_vectors)
    jax.block_until_ready(neighbors.indices)

    # PBC path — exercises the on-device shift reconstruction + fold.
    cell = jnp.eye(3, dtype=jnp.float32) * 10.0
    pbc = jnp.array([True, True, True])
    coords_pbc = jax.random.uniform(
        k2, (1, n_atoms, 3), dtype=jnp.float32, minval=0.0, maxval=10.0
    )
    nl_pbc = VerletCellList(skin=1.0)
    neighbors_pbc = nl_pbc(3.0, species, coords_pbc, cell=cell, pbc=pbc)
    jax.block_until_ready(neighbors_pbc.distances)
    jax.block_until_ready(neighbors_pbc.diff_vectors)
    jax.block_until_ready(neighbors_pbc.indices)

    print("KERNEL_OK")
</pallas_src>

<mosaic_0001>
module attributes {stable_mosaic.version = 11 : i64} {
  func.func @_pair_geom_kernel(%arg0: i32, %arg1: memref<6x128xf32, #tpu.memory_space<vmem>>, %arg2: memref<4x128xf32, #tpu.memory_space<vmem>>) attributes {dimension_semantics = [#tpu.dimension_semantics<parallel>], iteration_bounds = array<i64: 1>, scalar_prefetch = 0 : i64, scratch_operands = 0 : i64, tpu.core_type = #tpu.core_type<tc>, window_params = [{transform_indices = @transform_0, window_bounds = array<i64: 6, 128>}, {transform_indices = @transform_1, window_bounds = array<i64: 4, 128>}]} {
    %c0 = arith.constant 0 : index
    %c0_0 = arith.constant 0 : index
    %0 = vector.load %arg1[%c0, %c0_0] : memref<6x128xf32, #tpu.memory_space<vmem>>, vector<6x128xf32>
    %1 = vector.extract_strided_slice %0 {offsets = [0, 0], sizes = [3, 128], strides = [1, 1]} : vector<6x128xf32> to vector<3x128xf32>
    %2 = vector.extract_strided_slice %0 {offsets = [3, 0], sizes = [3, 128], strides = [1, 1]} : vector<6x128xf32> to vector<3x128xf32>
    %3 = arith.subf %1, %2 : vector<3x128xf32>
    %4 = arith.mulf %3, %3 : vector<3x128xf32>
    %cst = arith.constant dense<0.000000e+00> : vector<128xf32>
    %5 = vector.multi_reduction <add>, %4, %cst [0] : vector<3x128xf32> to vector<128xf32>
    %6 = vector.shape_cast %5 : vector<128xf32> to vector<1x128xf32>
    %7 = math.sqrt %6 : vector<1x128xf32>
    %8 = tpu.concatenate %3, %7 in 0 : vector<3x128xf32>, vector<1x128xf32> -> vector<4x128xf32>
    %c0_1 = arith.constant 0 : index
    %c0_2 = arith.constant 0 : index
    %9 = vector.load %arg2[%c0_1, %c0_2] : memref<4x128xf32, #tpu.memory_space<vmem>>, vector<4x128xf32>
    tpu.vector_store %arg2[%c0_1, %c0_2], %8 {strides = array<i32>} : memref<4x128xf32, #tpu.memory_space<vmem>>, vector<4x128xf32>,
    return
  }
  func.func @transform_0(%arg0: i32) -> (i32, i32) {
    %c0_i32 = arith.constant 0 : i32
    %c0_i32_0 = arith.constant 0 : i32
    return %c0_i32, %arg0 : i32, i32
  }
  func.func @transform_1(%arg0: i32) -> (i32, i32) {
    %c0_i32 = arith.constant 0 : i32
    %c0_i32_0 = arith.constant 0 : i32
    return %c0_i32, %arg0 : i32, i32
  }
}

</mosaic_0001>

<bundles_post_ra>
// kernel: _geometry_open.1
= control target key start
LH: loop header
LB: loop body
LE: loop exit
PB: predicated region body
PF: predicated region fallthrough
CT: control target
= control target key end

     0   :  { %vm14_vm0 = vcmask 1042432   ;;  %s55_s0 = inlined_call_operand.vmem [shape: f32[6,128], index: 0, kind: input, shape index: {}]   ;;  %s56_s1 = inlined_call_operand.vmem [shape: f32[4,128], index: 1, kind: output, shape index: {}]  }
   0x1   :  { %v8_v0 = vld [vmem:[%s55_s0] sm:$0x3f] }
   0x2   :  { %v10_v1 = vrot.slane %v8_v0, 3 }
   0x4   :  { %v12_v2 = vsub.f32 %v8_v0, %v10_v1 }
   0x6   :  { %v13_v3 = vmul.f32 %v12_v2, %v12_v2 }
   0x8   :  { %v15_v4 = vsel %vm14_vm0, %v13_v3, 0.0 }
   0x9   :  { %v16_v5 = vrot.slane %v15_v4, 4 }
   0xb   :  { %v17_v6 = vadd.f32 %v16_v5, %v15_v4 }
   0xd   :  { %v18_v7 = vrot.slane %v17_v6, 2 }
   0xf   :  { %v19_v8 = vadd.f32 %v18_v7, %v17_v6 }
  0x11   :  { %v20_v9 = vrot.slane %v19_v8, 1 }
  0x13   :  { %v21_v10 = vadd.f32 %v20_v9, %v19_v8 }
  0x15   :  { %35 = vrsqrt.f32 %v21_v10  ;;  %vm24_vm1 = vcmp.eq.f32.partialorder %v21_v10, inf  ;;  %v27_v12 = vand.u32 2147483648, %v21_v10  ;;  %vm26_vm2 = vcmp.eq.f32.partialorder %v21_v10, 0.0 }
  0x1f   :  { %v36_v11 = vpop.eup %35 }
  0x20   :  { %v23_v13 = vmul.f32 %v36_v11, %v21_v10 }
  0x22   :  { %v25_v14 = vsel %vm24_vm1, %v21_v10, %v23_v13 }
  0x23   :  { %v28_v15 = vsel %vm26_vm2, %v27_v12, %v25_v14 }
  0x24   :  { %v29_v16 = vsel %vm14_vm0, %v12_v2, %v28_v15 }
  0x25   :  { %30 = vst [vmem:[%s56_s1] sm:$0xf] %v29_v16 }

</bundles_post_ra>
